<compile_context>
chip_gen: v7x
topology: tpu7x:2x2x1
jax: 0.10.0
libtpu: 0.0.40
codegen_flags: <defaults>
</compile_context>

<pallas_src>
import functools

import jax
import jax.numpy as jnp
from jax import lax
from jax.experimental import pallas as pl
from jax.experimental.pallas import tpu as pltpu

POOL_SIZE = 3          # the module's (default) pooling size
PAD = POOL_SIZE // 2   # = 1


# ----------------------------------------------------------------------------
# Kernel
# ----------------------------------------------------------------------------
def _shift_lanes(x, d):
    """y[:, i] = x[:, i + d] if 0 <= i + d < n else 0 (static shift, zero fill)."""
    if d == 0:
        return x
    rows, n = x.shape
    if abs(d) >= n:
        return jnp.zeros_like(x)
    z = jnp.zeros((rows, abs(d)), x.dtype)
    if d > 0:
        return jnp.concatenate([x[:, d:], z], axis=1)
    return jnp.concatenate([z, x[:, : n + d]], axis=1)


def pooling_kernel(aux_ref, x_ref, o_ref, *, width):
    # x block: (R_TILE, L) where each row is `g` whole HxW planes laid out
    # contiguously along the lane axis.  Accumulate in f32.
    x = x_ref[...].astype(jnp.float32)

    # Resident auxiliary rows (precomputed once in the wrapper, exact values):
    recip = aux_ref[0:1, :]   # 1 / (rows_valid * cols_valid)       (1, L)
    has_l = aux_ref[1:2, :]   # 0.0 where w == 0,   else 1.0
    has_r = aux_ref[2:3, :]   # 0.0 where w == W-1, else 1.0
    has_u = aux_ref[3:4, :]   # 0.0 where h == 0,   else 1.0
    has_d = aux_ref[4:5, :]   # 0.0 where h == H-1, else 1.0

    # Horizontal 3-tap sum.  In the flattened (folded) layout a +-1 lane shift
    # leaks across image-row and channel boundaries; has_l / has_r zero exactly
    # those contributions.
    row_sum = x + _shift_lanes(x, -1) * has_l + _shift_lanes(x, 1) * has_r

    # Vertical 3-tap sum: +-width in flat index is exactly +-1 image row.
    # has_u / has_d zero the taps that would cross the top/bottom image edge
    # (and therefore also any folded-channel boundary).
    pool_sum = (row_sum
                + _shift_lanes(row_sum, -width) * has_u
                + _shift_lanes(row_sum, width) * has_d)

    # count_include_pad=False average, then subtract the input.
    o_ref[...] = (pool_sum * recip - x).astype(o_ref.dtype)


# ----------------------------------------------------------------------------
# Host-side helpers
# ----------------------------------------------------------------------------
def _make_aux(g, H, W):
    """(5, g*H*W) f32: [recip valid-count, has_l, has_r, has_u, has_d]."""
    ih = jnp.arange(H, dtype=jnp.int32)
    iw = jnp.arange(W, dtype=jnp.int32)
    rows_valid = jnp.minimum(ih + PAD, H - 1) - jnp.maximum(ih - PAD, 0) + 1
    cols_valid = jnp.minimum(iw + PAD, W - 1) - jnp.maximum(iw - PAD, 0) + 1
    count = (rows_valid[:, None] * cols_valid[None, :]).astype(jnp.float32)
    recip = 1.0 / count                                        # (H, W)
    h_idx = jnp.broadcast_to(ih[:, None], (H, W))
    w_idx = jnp.broadcast_to(iw[None, :], (H, W))
    has_l = (w_idx > 0).astype(jnp.float32)
    has_r = (w_idx < W - 1).astype(jnp.float32)
    has_u = (h_idx > 0).astype(jnp.float32)
    has_d = (h_idx < H - 1).astype(jnp.float32)
    one = jnp.stack([recip, has_l, has_r, has_u, has_d], 0).reshape(5, H * W)
    return jnp.tile(one, (1, g))                               # (5, g*H*W)


def _vmem_capacity_bytes(default=64 << 20):
    """Physical VMEM per core; conservative (v7x-sized) fallback."""
    try:
        info = pltpu.get_tpu_info()
        for name in ("vmem_capacity_bytes", "vmem_size_bytes", "vmem_bytes"):
            v = getattr(info, name, None)
            if v:
                return int(v)
    except Exception:
        pass
    return default


def _pick_fold(NC, HW, *, target_lanes=512, max_lanes=8192):
    """Smallest channel-fold g (divisor of N*C) giving a lane-dense row."""
    divs = [d for d in range(1, NC + 1) if NC % d == 0 and d * HW <= max_lanes]
    aligned = [d for d in divs if (d * HW) % 128 == 0]
    if not aligned:
        return 1
    wide = [d for d in aligned if d * HW >= target_lanes]
    return min(wide) if wide else max(aligned)


def _cdiv(a, b):
    return -(-a // b)


def _ceil_to(v, m):
    return _cdiv(v, m) * m


def _pick_r_tile(R, L, itemsize, budget_f32_bytes):
    """Row tile: sublane-aligned, sized from the f32 working-set budget,
    capped so the 1-D grid has >= 2 steps (feeds both v7x TensorCores)."""
    sub = {4: 8, 2: 16, 1: 32}.get(itemsize, 8)
    if R <= sub:
        return R                                  # full dim -> always legal
    r_tile = max(sub, (budget_f32_bytes // (L * 4)) // sub * sub)
    r_tile = min(r_tile, (R // sub) * sub)
    if _cdiv(R, r_tile) < 2:
        half = _ceil_to(_cdiv(R, 2), sub)
        r_tile = max(sub, min(r_tile, half))
    return r_tile


# ----------------------------------------------------------------------------
# Wrapper
# ----------------------------------------------------------------------------
def pooling(x):
    """x: (N, C, H, W) -> AvgPool2d(3,1,1,count_include_pad=False)(x) - x."""
    N, C, H, W = x.shape
    HW = H * W
    NC = N * C
    itemsize = x.dtype.itemsize

    # Lane-dense row layout: fold g channel planes into the lane axis.
    g = _pick_fold(NC, HW)
    R = NC // g
    L = g * HW
    xf = x.reshape(R, L)              # free view: W stays innermost
    aux = _make_aux(g, H, W)          # tiny, stays resident in VMEM

    # Per-generation sizing: 64 MiB physical on v7x vs 128 MiB on v5e/v6e.
    vmem_cap = _vmem_capacity_bytes()
    vmem_limit = min(3 * vmem_cap // 4, 96 * 1024 * 1024)
    # Budget is on the *f32* working set (input promoted in-kernel); ~1/12 of
    # the limit leaves room for 2x in + 2x out pipeline buffers + shift temps.
    budget = max(1 << 20, min(vmem_limit // 12, 8 << 20))
    r_tile = _pick_r_tile(R, L, itemsize, budget)
    grid = (_cdiv(R, r_tile),)

    flops = 10 * NC * HW
    bytes_accessed = 2 * NC * HW * itemsize + aux.size * 4

    out_flat = pl.pallas_call(
        functools.partial(pooling_kernel, width=W),
        out_shape=jax.ShapeDtypeStruct((R, L), x.dtype),
        grid=grid,
        in_specs=[
            pl.BlockSpec((5, L), lambda i: (0, 0)),          # resident aux
            pl.BlockSpec((r_tile, L), lambda i: (i, 0)),
        ],
        out_specs=pl.BlockSpec((r_tile, L), lambda i: (i, 0)),
        compiler_params=pltpu.CompilerParams(
            dimension_semantics=("parallel",),
            vmem_limit_bytes=vmem_limit,
        ),
        cost_estimate=pl.CostEstimate(
            flops=flops, transcendentals=0, bytes_accessed=bytes_accessed),
    )(aux, xf)

    return out_flat.reshape(N, C, H, W)


def pooling_ref(x):
    """Pure-JAX reference: torch.nn.AvgPool2d(3, 1, 1, count_include_pad=False)(x) - x."""
    win = (1, 1, POOL_SIZE, POOL_SIZE)
    strides = (1, 1, 1, 1)
    pad = ((0, 0), (0, 0), (PAD, PAD), (PAD, PAD))
    s = lax.reduce_window(x, 0.0, lax.add, win, strides, pad)
    c = lax.reduce_window(jnp.ones_like(x), 0.0, lax.add, win, strides, pad)
    return s / c - x


if __name__ == "__main__":
    key = jax.random.PRNGKey(0)
    x = jax.random.normal(key, (2, 4, 16, 16), dtype=jnp.float32)

    out = pooling(x)
    out = jax.block_until_ready(out)

    ref = pooling_ref(x)
    assert out.shape == ref.shape and out.dtype == ref.dtype
    assert jnp.allclose(out, ref, atol=1e-5, rtol=1e-5), (
        float(jnp.max(jnp.abs(out - ref)))
    )
    print("KERNEL_OK")
</pallas_src>

<mosaic_0001>
module attributes {stable_mosaic.version = 11 : i64} {
  func.func @pooling_kernel(%arg0: i32, %arg1: memref<5x512xf32, #tpu.memory_space<vmem>>, %arg2: memref<4x512xf32, #tpu.memory_space<vmem>>, %arg3: memref<4x512xf32, #tpu.memory_space<vmem>>) attributes {dimension_semantics = [#tpu.dimension_semantics<parallel>], iteration_bounds = array<i64: 1>, scalar_prefetch = 0 : i64, scratch_operands = 0 : i64, tpu.core_type = #tpu.core_type<tc>, window_params = [{pipeline_mode = #tpu.pipeline_mode<synchronous>, transform_indices = @transform_0, window_bounds = array<i64: 5, 512>}, {transform_indices = @transform_1, window_bounds = array<i64: 4, 512>}, {transform_indices = @transform_2, window_bounds = array<i64: 4, 512>}]} {
    %c0 = arith.constant 0 : index
    %c0_0 = arith.constant 0 : index
    %0 = vector.load %arg2[%c0, %c0_0] : memref<4x512xf32, #tpu.memory_space<vmem>>, vector<4x512xf32>
    %c0_1 = arith.constant 0 : index
    %c0_2 = arith.constant 0 : index
    %1 = vector.load %arg1[%c0_1, %c0_2] : memref<5x512xf32, #tpu.memory_space<vmem>>, vector<1x512xf32>
    %c1 = arith.constant 1 : index
    %c0_3 = arith.constant 0 : index
    %2 = vector.load %arg1[%c1, %c0_3] : memref<5x512xf32, #tpu.memory_space<vmem>>, vector<1x512xf32>
    %c2 = arith.constant 2 : index
    %c0_4 = arith.constant 0 : index
    %3 = vector.load %arg1[%c2, %c0_4] : memref<5x512xf32, #tpu.memory_space<vmem>>, vector<1x512xf32>
    %c3 = arith.constant 3 : index
    %c0_5 = arith.constant 0 : index
    %4 = vector.load %arg1[%c3, %c0_5] : memref<5x512xf32, #tpu.memory_space<vmem>>, vector<1x512xf32>
    %c4 = arith.constant 4 : index
    %c0_6 = arith.constant 0 : index
    %5 = vector.load %arg1[%c4, %c0_6] : memref<5x512xf32, #tpu.memory_space<vmem>>, vector<1x512xf32>
    %cst = arith.constant 0.000000e+00 : f32
    %6 = vector.broadcast %cst : f32 to vector<4x1xf32>
    %7 = vector.extract_strided_slice %0 {offsets = [0, 0], sizes = [4, 511], strides = [1, 1]} : vector<4x512xf32> to vector<4x511xf32>
    %8 = tpu.concatenate %6, %7 in 1 : vector<4x1xf32>, vector<4x511xf32> -> vector<4x512xf32>
    %9 = vector.broadcast %2 : vector<1x512xf32> to vector<4x512xf32>
    %10 = arith.mulf %8, %9 : vector<4x512xf32>
    %11 = arith.addf %0, %10 : vector<4x512xf32>
    %cst_7 = arith.constant 0.000000e+00 : f32
    %12 = vector.broadcast %cst_7 : f32 to vector<4x1xf32>
    %13 = vector.extract_strided_slice %0 {offsets = [0, 1], sizes = [4, 511], strides = [1, 1]} : vector<4x512xf32> to vector<4x511xf32>
    %14 = tpu.concatenate %13, %12 in 1 : vector<4x511xf32>, vector<4x1xf32> -> vector<4x512xf32>
    %15 = vector.broadcast %3 : vector<1x512xf32> to vector<4x512xf32>
    %16 = arith.mulf %14, %15 : vector<4x512xf32>
    %17 = arith.addf %11, %16 : vector<4x512xf32>
    %cst_8 = arith.constant 0.000000e+00 : f32
    %18 = vector.broadcast %cst_8 : f32 to vector<4x16xf32>
    %19 = vector.extract_strided_slice %17 {offsets = [0, 0], sizes = [4, 496], strides = [1, 1]} : vector<4x512xf32> to vector<4x496xf32>
    %20 = tpu.concatenate %18, %19 in 1 : vector<4x16xf32>, vector<4x496xf32> -> vector<4x512xf32>
    %21 = vector.broadcast %4 : vector<1x512xf32> to vector<4x512xf32>
    %22 = arith.mulf %20, %21 : vector<4x512xf32>
    %23 = arith.addf %17, %22 : vector<4x512xf32>
    %cst_9 = arith.constant 0.000000e+00 : f32
    %24 = vector.broadcast %cst_9 : f32 to vector<4x16xf32>
    %25 = vector.extract_strided_slice %17 {offsets = [0, 16], sizes = [4, 496], strides = [1, 1]} : vector<4x512xf32> to vector<4x496xf32>
    %26 = tpu.concatenate %25, %24 in 1 : vector<4x496xf32>, vector<4x16xf32> -> vector<4x512xf32>
    %27 = vector.broadcast %5 : vector<1x512xf32> to vector<4x512xf32>
    %28 = arith.mulf %26, %27 : vector<4x512xf32>
    %29 = arith.addf %23, %28 : vector<4x512xf32>
    %30 = vector.broadcast %1 : vector<1x512xf32> to vector<4x512xf32>
    %31 = arith.mulf %29, %30 : vector<4x512xf32>
    %32 = arith.subf %31, %0 : vector<4x512xf32>
    %c0_10 = arith.constant 0 : index
    %c0_11 = arith.constant 0 : index
    %33 = vector.load %arg3[%c0_10, %c0_11] : memref<4x512xf32, #tpu.memory_space<vmem>>, vector<4x512xf32>
    tpu.vector_store %arg3[%c0_10, %c0_11], %32 {strides = array<i32>} : memref<4x512xf32, #tpu.memory_space<vmem>>, vector<4x512xf32>,
    return
  }
  func.func @transform_0(%arg0: i32) -> (i32, i32) {
    %c0_i32 = arith.constant 0 : i32
    %c0_i32_0 = arith.constant 0 : i32
    %c0_i32_1 = arith.constant 0 : i32
    return %c0_i32, %c0_i32_0 : i32, i32
  }
  func.func @transform_1(%arg0: i32) -> (i32, i32) {
    %c0_i32 = arith.constant 0 : i32
    %c0_i32_0 = arith.constant 0 : i32
    return %arg0, %c0_i32 : i32, i32
  }
  func.func @transform_2(%arg0: i32) -> (i32, i32) {
    %c0_i32 = arith.constant 0 : i32
    %c0_i32_0 = arith.constant 0 : i32
    return %arg0, %c0_i32 : i32, i32
  }
}

</mosaic_0001>

<bundles_post_ra>
// kernel: tpu_custom_call.1
= control target key start
LH: loop header
LB: loop body
LE: loop exit
PB: predicated region body
PF: predicated region fallthrough
CT: control target
= control target key end

     0   :  { %7 = vsyncpa [#allocation3], 0  ;;  %s501_s0 = inlined_call_operand.hbm [shape: f32[5,512], index: 0, kind: input, shape index: {}]   ;;  %s502_s1 = inlined_call_operand.hbm [shape: f32[4,512], index: 1, kind: input, shape index: {}]   ;;  %s503_s2 = inlined_call_operand.hbm [shape: f32[4,512], index: 2, kind: output, shape index: {}]  }
   0x1   :  { %8 = vsyncpa [#allocation6], 0 }
   0x2   :  { %9 = vsyncpa [#allocation4], 0  ;;  %s387_s9 = smov [#allocation2]   ;;  %s388_s11 = smov [#allocation5]  }
   0x3   :  { %s16_s10 = sshll.u32 %s387_s9, 4  ;;  %s26_s12 = sshll.u32 %s388_s11, 4  ;;  %s17_s10 = int_to_ptr.vmem [resolvable:$true] %s16_s10  ;;  %s27_s12 = int_to_ptr.vmem [resolvable:$true] %s26_s12 }
   0x4   :  { %s315_s15 = scalar_lea.hbm %s501_s0, 512 }
   0x5   :  { %p316_p0 = scmp.ne.s32.totalorder %s501_s0, %s315_s15  ;;  %p319_p1 = scmp.lt.u32.totalorder %s315_s15, %s501_s0 }
   0x7   :  { %p321_p2 = pnand %p319_p1, %p316_p0 }
   0x9   :  { %324 = shalt.err (!%p321_p2)
}
   0xa   :  { %s325_s20 = scalar_lea.vmem %s17_s10, 512  ;;  %p330_p4 = scmp.lt.s32.totalorder %s17_s10, %s17_s10 }
   0xb   :  { %p326_p3 = scmp.ne.s32.totalorder %s17_s10, %s325_s20  ;;  %p331_p5 = scmp.lt.s32.totalorder %s325_s20, %s325_s20 }
   0xd   :  { %p332_p6 = por %p331_p5, %p330_p4 }
   0xf   :  { %p333_p7 = pnand %p332_p6, %p326_p3 }
  0x11   :  { %336 = shalt.err (!%p333_p7)
}
  0x12   :  { %19 = dma.hbm_to_vmem [thread:$0]  %s501_s0, 512, %s17_s10, [#allocation3]  }
  0x13   :  { %s337_s25 = scalar_lea.hbm %s502_s1, 256 }
  0x14   :  { %p338_p8 = scmp.ne.s32.totalorder %s502_s1, %s337_s25  ;;  %p341_p9 = scmp.lt.u32.totalorder %s337_s25, %s502_s1 }
  0x16   :  { %p343_p10 = pnand %p341_p9, %p338_p8 }
  0x18   :  { %346 = shalt.err (!%p343_p10)
}
  0x19   :  { %s347_s30 = scalar_lea.vmem %s27_s12, 256  ;;  %p352_p12 = scmp.lt.s32.totalorder %s27_s12, %s27_s12 }
  0x1a   :  { %p348_p11 = scmp.ne.s32.totalorder %s27_s12, %s347_s30  ;;  %p353_p13 = scmp.lt.s32.totalorder %s347_s30, %s347_s30 }
  0x1c   :  { %p354_p0 = por %p353_p13, %p352_p12 }
  0x1e   :  { %p355_p1 = pnand %p354_p0, %p348_p11 }
  0x20   :  { %358 = shalt.err (!%p355_p1)
}
  0x21   :  { %29 = dma.hbm_to_vmem [thread:$0]  %s502_s1, 256, %s27_s12, [#allocation6]  }
  0x22   :  { %381 = dma.done.wait [#allocation3], 512  }
  0x23   :  { %382 = vsyncadd [#allocation3], 4294966784 }
  0x24   :  { %383 = dma.done.wait [#allocation6], 256  }
  0x25   :  { %384 = vsyncadd [#allocation6], 4294967040  ;;  %v433_v0 = vld [vmem:[#allocation5 + $0x8] sm:$0xff]  ;;  %v435_v1 = vld [vmem:[#allocation5] sm:$0xff]  ;;  %s389_s4 = smov 1   ;;  %s390_s5 = smov 127   ;;  %v69_v4 = vlaneseq }
  0x26   :  { %55 = vrot.lane.b32.xlu1 %v433_v0, %s389_s4  ;;  %51 = vrot.lane.b32.xlu0 %v435_v1, %s389_s4  ;;  %v50_v2 = vcombine.high %v433_v0, %v433_v0  ;;  %v49_v3 = vcombine.high %v435_v1, %v435_v1  ;;  %v40_v11 = vld [vmem:[#allocation2 + $0x1] ss:$8 sm:$0xf]  ;;  %vm59_vm0 = vcmask 7168   ;;  %vm111_vm1 = vcmask 1039360   ;;  %s391_s1 = smov 16  }
  0x27   :  { %v70_v5 = vshrl.u32 %v69_v4, 7  ;;  %v42_v15 = vld [vmem:[#allocation2 + $0x2] ss:$8 sm:$0xf]  ;;  %s392_s6 = smov 112   ;;  %vm167_vm2 = vcmask 130048  }
  0x28   :  { %v44_v56 = vld [vmem:[#allocation2 + $0x3] ss:$8 sm:$0xf]  ;;  %vm219_vm3 = vcmask 916480   ;;  %s393_s7 = smov [#allocation7]  }
  0x29   :  { %v445_v8 = vsub.s32 0, %v70_v5  ;;  %v447_v9 = vsub.s32 1, %v70_v5  ;;  %v449_v10 = vsub.s32 2, %v70_v5  ;;  %v451_v12 = vsub.s32 3, %v70_v5  ;;  %s296_s8 = sshll.u32 %s393_s7, 4  ;;  %s297_s8 = int_to_ptr.vmem [resolvable:$true] %s296_s8 }
  0x2a   :  { %57 = vrot.lane.b32.xlu1 %v50_v2, %s389_s4  ;;  %103 = vrot.lane.b32.xlu0 %v435_v1, %s390_s5  ;;  %s359_s9 = scalar_lea.vmem %s297_s8, 256  ;;  %p364_p3 = scmp.lt.s32.totalorder %s297_s8, %s297_s8 }
  0x2b   :  { %v72_v16 = vrot.slane %v40_v11, %v445_v8  ;;  %v76_v17 = vrot.slane %v40_v11, %v447_v9  ;;  %v80_v18 = vrot.slane %v40_v11, %v449_v10  ;;  %v84_v20 = vrot.slane %v40_v11, %v451_v12  ;;  %p360_p2 = scmp.ne.s32.totalorder %s297_s8, %s359_s9  ;;  %p365_p4 = scmp.lt.s32.totalorder %s359_s9, %s359_s9 }
  0x2c   :  { %v124_v21 = vrot.slane %v42_v15, %v445_v8  ;;  %v136_v27 = vrot.slane %v42_v15, %v451_v12  ;;  %v128_v31 = vrot.slane %v42_v15, %v447_v9  ;;  %v132_v33 = vrot.slane %v42_v15, %v449_v10 }
  0x2d   :  { %v184_v57 = vrot.slane %v44_v56, %v447_v9  ;;  %v180_v60 = vrot.slane %v44_v56, %v445_v8  ;;  %v192_v61 = vrot.slane %v44_v56, %v451_v12  ;;  %v188_v5 = vrot.slane %v44_v56, %v449_v10  ;;  %p366_p5 = por %p365_p4, %p364_p3 }
  0x2e   :  { %105 = vrot.lane.b32.xlu1 %v49_v3, %s390_s5  ;;  %53 = vrot.lane.b32.xlu0 %v49_v3, %s389_s4  ;;  %v46_v3 = vld [vmem:[#allocation2 + $0x4] ss:$8 sm:$0xf] }
  0x2f   :  { %v232_v15 = vrot.slane %v46_v3, %v445_v8  ;;  %p367_p6 = pnand %p366_p5, %p360_p2 }
  0x32   :  { %109 = vrot.lane.b32.xlu1 %v50_v2, %s390_s5  ;;  %107 = vrot.lane.b32.xlu0 %v433_v0, %s390_s5 }
  0x98   :  { %v56_v6 = vpop.permute.xlu1 %55  ;;  %v52_v7 = vpop.permute.xlu0 %51 }
  0x99   :  { %v67_v19 = vsel %vm59_vm0, 0.0, %v52_v7 }
  0x9a   :  { %v89_v28 = vmul.f32 %v72_v16, %v67_v19 }
  0x9c   :  { %v58_v13 = vpop.permute.xlu1 %57  ;;  %v104_v14 = vpop.permute.xlu0 %103 }
  0x9d   :  { %v62_v24 = vsel %vm59_vm0, %v56_v6, %v58_v13 }
  0x9e   :  { %v92_v34 = vmul.f32 %v84_v20, %v62_v24  ;;  %v240_v24 = vrot.slane %v46_v3, %v449_v10 }
  0xa0   :  { %v106_v22 = vpop.permute.xlu1 %105  ;;  %v54_v23 = vpop.permute.xlu0 %53 }
  0xa1   :  { %v60_v25 = vsel %vm59_vm0, %v52_v7, %v54_v23  ;;  %v61_v26 = vsel %vm59_vm0, %v54_v23, %v56_v6  ;;  %v112_v32 = vsel %vm111_vm1, %v104_v14, %v106_v22  ;;  %v38_v7 = vld [vmem:[#allocation2] ss:$8 sm:$0xf] }
  0xa2   :  { %v90_v29 = vmul.f32 %v76_v17, %v60_v25  ;;  %v91_v30 = vmul.f32 %v80_v18, %v61_v26  ;;  %v141_v41 = vmul.f32 %v124_v21, %v112_v32  ;;  %v236_v17 = vrot.slane %v46_v3, %v447_v9 }
  0xa3   :  { %v267_v19 = vrot.slane %v38_v7, %v445_v8  ;;  %v271_v20 = vrot.slane %v38_v7, %v447_v9  ;;  %v244_v25 = vrot.slane %v46_v3, %v451_v12  ;;  %v279_v32 = vrot.slane %v38_v7, %v451_v12 }
  0xa4   :  { %v97_v35 = vcombine.low %v89_v28, %v90_v29  ;;  %v110_v36 = vpop.permute.xlu1 %109  ;;  %v108_v37 = vpop.permute.xlu0 %107  ;;  %v98_v42 = vcombine.low %v91_v30, %v92_v34 }
  0xa5   :  { %v119_v38 = vsel %vm111_vm1, %v110_v36, 0.0  ;;  %v113_v39 = vsel %vm111_vm1, %v106_v22, %v108_v37  ;;  %v114_v40 = vsel %vm111_vm1, %v108_v37, %v110_v36 }
  0xa6   :  { %v144_v43 = vmul.f32 %v136_v27, %v119_v38  ;;  %v142_v44 = vmul.f32 %v128_v31, %v113_v39  ;;  %v143_v45 = vmul.f32 %v132_v33, %v114_v40  ;;  %v101_v46 = vadd.f32 %v97_v35, %v435_v1 }
  0xa7   :  { %v102_v49 = vadd.f32 %v98_v42, %v433_v0  ;;  %v275_v27 = vrot.slane %v38_v7, %v449_v10  ;;  %v280_v33 = vcombine.low %v267_v19, %v271_v20 }
  0xa8   :  { %v149_v47 = vcombine.low %v141_v41, %v142_v44  ;;  %v150_v48 = vcombine.low %v143_v45, %v144_v43 }
  0xa9   :  { %v281_v41 = vcombine.low %v275_v27, %v279_v32 }
  0xaa   :  { %v153_v50 = vadd.f32 %v149_v47, %v101_v46  ;;  %v154_v51 = vadd.f32 %v150_v48, %v102_v49 }
  0xac   :  { %159 = vrot.lane.b32.xlu0 %v153_v50, %s391_s1  ;;  %v157_v52 = vcombine.high %v153_v50, %v153_v50  ;;  %v158_v53 = vcombine.high %v154_v51, %v154_v51 }
  0xae   :  { %161 = vrot.lane.b32.xlu1 %v157_v52, %s391_s1 }
  0xb0   :  { %163 = vrot.lane.b32.xlu0 %v154_v51, %s391_s1 }
  0xb2   :  { %165 = vrot.lane.b32.xlu1 %v158_v53, %s391_s1 }
  0xb4   :  { %211 = vrot.lane.b32.xlu0 %v153_v50, %s392_s6 }
  0xb6   :  { %213 = vrot.lane.b32.xlu1 %v157_v52, %s392_s6 }
  0xb8   :  { %215 = vrot.lane.b32.xlu0 %v154_v51, %s392_s6 }
  0xba   :  { %217 = vrot.lane.b32.xlu1 %v158_v53, %s392_s6 }
 0x11e   :  { %v160_v54 = vpop.permute.xlu0 %159 }
 0x11f   :  { %v175_v63 = vsel %vm167_vm2, 0.0, %v160_v54 }
 0x120   :  { %v162_v55 = vpop.permute.xlu1 %161  ;;  %v197_v13 = vmul.f32 %v180_v60, %v175_v63 }
 0x121   :  { %v168_v59 = vsel %vm167_vm2, %v160_v54, %v162_v55 }
 0x122   :  { %v164_v58 = vpop.permute.xlu0 %163  ;;  %v198_v4 = vmul.f32 %v184_v57, %v168_v59 }
 0x123   :  { %v169_v11 = vsel %vm167_vm2, %v162_v55, %v164_v58 }
 0x124   :  { %v166_v62 = vpop.permute.xlu1 %165  ;;  %v205_v21 = vcombine.low %v197_v13, %v198_v4  ;;  %v199_v22 = vmul.f32 %v188_v5, %v169_v11 }
 0x125   :  { %v170_v2 = vsel %vm167_vm2, %v164_v58, %v166_v62 }
 0x126   :  { %v212_v6 = vpop.permute.xlu0 %211  ;;  %v200_v14 = vmul.f32 %v192_v61, %v170_v2  ;;  %v209_v34 = vadd.f32 %v205_v21, %v153_v50 }
 0x128   :  { %v214_v16 = vpop.permute.xlu1 %213  ;;  %v206_v28 = vcombine.low %v199_v22, %v200_v14 }
 0x129   :  { %v220_v18 = vsel %vm219_vm3, %v212_v6, %v214_v16 }
 0x12a   :  { %v216_v23 = vpop.permute.xlu0 %215  ;;  %v249_v29 = vmul.f32 %v232_v15, %v220_v18  ;;  %v210_v38 = vadd.f32 %v206_v28, %v154_v51 }
 0x12b   :  { %v221_v26 = vsel %vm219_vm3, %v214_v16, %v216_v23 }
 0x12c   :  { %v250_v30 = vmul.f32 %v236_v17, %v221_v26  ;;  %v218_v31 = vpop.permute.xlu1 %217 }
 0x12d   :  { %v222_v8 = vsel %vm219_vm3, %v216_v23, %v218_v31  ;;  %v227_v9 = vsel %vm219_vm3, %v218_v31, 0.0 }
 0x12e   :  { %v257_v35 = vcombine.low %v249_v29, %v250_v30  ;;  %v251_v36 = vmul.f32 %v240_v24, %v222_v8  ;;  %v252_v37 = vmul.f32 %v244_v25, %v227_v9 }
 0x130   :  { %v261_v39 = vadd.f32 %v257_v35, %v209_v34  ;;  %v258_v40 = vcombine.low %v251_v36, %v252_v37 }
 0x132   :  { %v262_v10 = vadd.f32 %v258_v40, %v210_v38  ;;  %v284_v42 = vmul.f32 %v280_v33, %v261_v39 }
 0x134   :  { %v285_v43 = vmul.f32 %v281_v41, %v262_v10  ;;  %v286_v12 = vsub.f32 %v284_v42, %v435_v1 }
 0x136   :  { %v287_v44 = vsub.f32 %v285_v43, %v433_v0  ;;  %288 = vst [vmem:[#allocation7] sm:$0xff] %v286_v12 }
 0x138   :  { %289 = vst [vmem:[#allocation7 + $0x8] sm:$0xff] %v287_v44 }
 0x139   :  { %370 = shalt.err (!%p367_p6)
}
 0x13a   :  { %s371_s12 = scalar_lea.hbm %s503_s2, 256 }
 0x13b   :  { %p372_p7 = scmp.ne.s32.totalorder %s503_s2, %s371_s12  ;;  %p375_p8 = scmp.lt.u32.totalorder %s371_s12, %s503_s2 }
 0x13d   :  { %p377_p9 = pnand %p375_p8, %p372_p7 }
 0x13f   :  { %380 = shalt.err (!%p377_p9)
}
 0x140   :  { %299 = dma.vmem_to_hbm [thread:$0]  %s297_s8, 256, %s503_s2, [#allocation4]  }
 0x141   :  { %385 = dma.done.wait [#allocation4], 256  }
 0x142   :  { %386 = vsyncadd [#allocation4], 4294967040 }
 0x143   :  { %303 = vsyncpa [#allocation3], 1 }
 0x144   :  { %304 = vsyncpa [#allocation6], 1 }
 0x145   :  { %305 = vsyncpa [#allocation4], 1 }

</bundles_post_ra>
